<compile_context>
chip_gen: v5e
topology: v5e:2x2
jax: 0.10.0
libtpu: 0.0.40
codegen_flags: <defaults>
</compile_context>

<pallas_src>
import functools

import jax
import jax.numpy as jnp
from jax.experimental import pallas as pl
from jax.experimental.pallas import tpu as pltpu

CLASSES = 10


def _cdiv(a: int, b: int) -> int:
    return (a + b - 1) // b


def _round_up(x: int, m: int) -> int:
    return ((x + m - 1) // m) * m


def _pick_tiles(batch: int, block_batch: int) -> tuple[int, int]:
    """Balanced sublane-aligned batch tiles.

    Targets >=2 tiles whenever possible (v7x: two TensorCores share the
    'parallel' grid axis) while capping each tile near `block_batch` rows;
    balanced tiles keep batch padding below 8 rows per tile.
    """
    min_rows = 8  # sublane alignment
    num_tiles = max(2, _cdiv(batch, block_batch)) if batch > min_rows else 1
    tb = _round_up(_cdiv(batch, num_tiles), min_rows)
    num_tiles = _cdiv(batch, tb)
    padded = tb * num_tiles
    return tb, padded


# ----------------------------- fused kernel -------------------------------- #

def _fused_mlp_kernel(*refs, n_layers: int, compute_dtype):
    """refs = (x_ref, w0, b0, w1, b1, ..., w_{L-1}, b_{L-1}, o_ref).

    Hidden layers: h = relu(h @ W_l + b_l) (dropout == identity in eval mode).
    Final layer:   logits = h @ W_L + b_L (lane-padded to 128 columns with
    -1e30 bias on pad columns), then numerically-stable log_softmax; only the
    (TB, 128) lane-dense block is written (pad columns hold ~-1e30).
    """
    x_ref = refs[0]
    o_ref = refs[-1]
    wb = refs[1:-1]

    h = x_ref[...]  # (TB, 784) already compute_dtype (bf16) from the wrapper
    for i in range(n_layers):
        w_ref = wb[2 * i]
        b_ref = wb[2 * i + 1]
        lhs = h if i == 0 else h.astype(compute_dtype)
        # MXU matmul: compute_dtype operands, f32 accumulation.
        y = jnp.dot(lhs, w_ref[...], preferred_element_type=jnp.float32)
        y = y + b_ref[...]  # (1, out) f32 bias broadcast
        if i < n_layers - 1:
            h = jnp.maximum(y, 0.0)        # ReLU in f32; dropout = identity
        else:
            m = jnp.max(y, axis=-1, keepdims=True)
            shifted = y - m                 # pad cols ~ -1e30 -> exp() == 0
            lse = jnp.log(jnp.sum(jnp.exp(shifted), axis=-1, keepdims=True))
            o_ref[...] = (shifted - lse).astype(o_ref.dtype)


# ----------------------------- wrapper -------------------------------------- #

def net_forward(params, data, *, block_batch: int = 1024,
                compute_dtype=jnp.bfloat16, out_dtype=jnp.bfloat16):
    """Equivalent of Net.forward (eval mode), single fused Pallas kernel."""
    batch, in_dim = data.shape
    n_layers = len(params)
    n_cls = params[-1][1].shape[-1]           # == CLASSES
    out_pad = _round_up(max(n_cls, 1), 128)   # lane-dense output width

    tb, padded = _pick_tiles(batch, block_batch)
    grid = (padded // tb,)

    # Boundary casts: bf16 x (dominant HBM stream) & bf16 weights, f32 biases.
    x = data.astype(compute_dtype)
    if padded != batch:
        x = jnp.pad(x, ((0, padded - batch), (0, 0)))

    ws = [w.astype(compute_dtype) for w, _ in params]
    bs = [b.reshape(1, -1).astype(jnp.float32) for _, b in params]

    # Lane-dense classifier head: zero weight columns + very-negative f32 bias
    # so the softmax over the real classes is numerically unchanged.
    pad_cols = out_pad - n_cls
    if pad_cols:
        ws[-1] = jnp.pad(ws[-1], ((0, 0), (0, pad_cols)))
        bs[-1] = jnp.concatenate(
            [bs[-1], jnp.full((1, pad_cols), -1e30, jnp.float32)], axis=1)

    in_specs = [pl.BlockSpec((tb, in_dim), lambda i: (i, 0))]
    flat_wb = []
    for w, b in zip(ws, bs):
        in_specs.append(pl.BlockSpec(w.shape, lambda i: (0, 0)))  # resident
        in_specs.append(pl.BlockSpec(b.shape, lambda i: (0, 0)))  # resident
        flat_wb += [w, b]

    kernel = functools.partial(_fused_mlp_kernel, n_layers=n_layers,
                               compute_dtype=compute_dtype)
    out = pl.pallas_call(
        kernel,
        out_shape=jax.ShapeDtypeStruct((padded, out_pad), out_dtype),
        grid=grid,
        in_specs=in_specs,
        out_specs=pl.BlockSpec((tb, out_pad), lambda i: (i, 0)),
        compiler_params=pltpu.CompilerParams(
            dimension_semantics=("parallel",)),
    )(x, *flat_wb)
    return out[:batch, :n_cls]


# ----------------------------- params / reference --------------------------- #

def init_params(key, input_dim, output_dims, dtype=jnp.float32):
    """Mirror nn.Linear default init (uniform +-1/sqrt(fan_in)); weights stored
    as (in_features, out_features)."""
    params = []
    dims = [input_dim] + list(output_dims) + [CLASSES]
    for i in range(len(dims) - 1):
        fan_in, fan_out = dims[i], dims[i + 1]
        key, kw, kb = jax.random.split(key, 3)
        bound = 1.0 / jnp.sqrt(fan_in)
        w = jax.random.uniform(kw, (fan_in, fan_out), dtype, -bound, bound)
        b = jax.random.uniform(kb, (fan_out,), dtype, -bound, bound)
        params.append((w, b))
    return params


def net_forward_ref(params, data):
    """Pure-JAX reference (f32) of Net.forward in eval mode."""
    x = data
    for w, b in params[:-1]:
        x = jnp.maximum(x @ w + b, 0.0)
    w, b = params[-1]
    return jax.nn.log_softmax(x @ w + b, axis=1)


# ----------------------------- main ----------------------------------------- #

if __name__ == "__main__":
    key = jax.random.PRNGKey(0)
    key_x, key_p = jax.random.split(key)

    batch = 8
    input_dim = 28 * 28            # 784, as implied by the module
    output_dims = [32, 16]         # small hidden dims
    dropout = 0.1                  # identity in eval mode

    x = jax.random.normal(key_x, (batch, input_dim), dtype=jnp.float32)
    params = init_params(key_p, input_dim, output_dims)

    fwd = jax.jit(net_forward)
    out = jax.block_until_ready(fwd(params, x))

    assert out.shape == (batch, CLASSES)
    # log_softmax rows should sum (in prob space) to ~1 (bf16-stored log-probs
    # -> a few-per-mille rounding per class).
    row_sums = jnp.exp(out.astype(jnp.float32)).sum(axis=1)
    assert bool(jnp.all(jnp.abs(row_sums - 1.0) < 2e-2))
    # Check against pure-JAX f32 reference (bf16 matmul operands + bf16 output
    # store -> loose tolerance).
    ref = net_forward_ref(params, x)
    assert bool(jnp.max(jnp.abs(out.astype(jnp.float32) - ref)) < 7.5e-2)

    print("KERNEL_OK")
</pallas_src>

<mosaic_0001>
module attributes {stable_mosaic.version = 11 : i64} {
  func.func @_fused_mlp_kernel(%arg0: i32, %arg1: memref<8x784xbf16, #tpu.memory_space<vmem>>, %arg2: memref<784x32xbf16, #tpu.memory_space<vmem>>, %arg3: memref<1x32xf32, #tpu.memory_space<vmem>>, %arg4: memref<32x16xbf16, #tpu.memory_space<vmem>>, %arg5: memref<1x16xf32, #tpu.memory_space<vmem>>, %arg6: memref<16x128xbf16, #tpu.memory_space<vmem>>, %arg7: memref<1x128xf32, #tpu.memory_space<vmem>>, %arg8: memref<8x128xbf16, #tpu.memory_space<vmem>>) attributes {dimension_semantics = [#tpu.dimension_semantics<parallel>], iteration_bounds = array<i64: 1>, scalar_prefetch = 0 : i64, scratch_operands = 0 : i64, tpu.core_type = #tpu.core_type<tc>, window_params = [{transform_indices = @transform_0, window_bounds = array<i64: 8, 784>}, {pipeline_mode = #tpu.pipeline_mode<synchronous>, transform_indices = @transform_1, window_bounds = array<i64: 784, 32>}, {pipeline_mode = #tpu.pipeline_mode<synchronous>, transform_indices = @transform_2, window_bounds = array<i64: 1, 32>}, {pipeline_mode = #tpu.pipeline_mode<synchronous>, transform_indices = @transform_3, window_bounds = array<i64: 32, 16>}, {pipeline_mode = #tpu.pipeline_mode<synchronous>, transform_indices = @transform_4, window_bounds = array<i64: 1, 16>}, {pipeline_mode = #tpu.pipeline_mode<synchronous>, transform_indices = @transform_5, window_bounds = array<i64: 16, 128>}, {pipeline_mode = #tpu.pipeline_mode<synchronous>, transform_indices = @transform_6, window_bounds = array<i64: 1, 128>}, {transform_indices = @transform_7, window_bounds = array<i64: 8, 128>}]} {
    %c0 = arith.constant 0 : index
    %c0_0 = arith.constant 0 : index
    %0 = vector.load %arg1[%c0, %c0_0] : memref<8x784xbf16, #tpu.memory_space<vmem>>, vector<8x784xbf16>
    %c0_1 = arith.constant 0 : index
    %c0_2 = arith.constant 0 : index
    %1 = vector.load %arg2[%c0_1, %c0_2] : memref<784x32xbf16, #tpu.memory_space<vmem>>, vector<784x32xbf16>
    %cst = arith.constant dense<0.000000e+00> : vector<8x32xf32>
    %2 = tpu.matmul %0, %1, %cst {dimension_numbers = #tpu.dot_dimension_numbers<[1], [0], [0], [1], [0, 0, 1, 1], [], []>} : vector<8x784xbf16>, vector<784x32xbf16>, vector<8x32xf32> -> vector<8x32xf32>
    %c0_3 = arith.constant 0 : index
    %c0_4 = arith.constant 0 : index
    %3 = vector.load %arg3[%c0_3, %c0_4] : memref<1x32xf32, #tpu.memory_space<vmem>>, vector<1x32xf32>
    %4 = vector.broadcast %3 : vector<1x32xf32> to vector<8x32xf32>
    %5 = arith.addf %2, %4 : vector<8x32xf32>
    %cst_5 = arith.constant 0.000000e+00 : f32
    %6 = vector.broadcast %cst_5 : f32 to vector<8x32xf32>
    %7 = arith.maximumf %5, %6 : vector<8x32xf32>
    %8 = arith.truncf %7 : vector<8x32xf32> to vector<8x32xbf16>
    %c0_6 = arith.constant 0 : index
    %c0_7 = arith.constant 0 : index
    %9 = vector.load %arg4[%c0_6, %c0_7] : memref<32x16xbf16, #tpu.memory_space<vmem>>, vector<32x16xbf16>
    %cst_8 = arith.constant dense<0.000000e+00> : vector<8x16xf32>
    %10 = tpu.matmul %8, %9, %cst_8 {dimension_numbers = #tpu.dot_dimension_numbers<[1], [0], [0], [1], [0, 0, 1, 1], [], []>} : vector<8x32xbf16>, vector<32x16xbf16>, vector<8x16xf32> -> vector<8x16xf32>
    %c0_9 = arith.constant 0 : index
    %c0_10 = arith.constant 0 : index
    %11 = vector.load %arg5[%c0_9, %c0_10] : memref<1x16xf32, #tpu.memory_space<vmem>>, vector<1x16xf32>
    %12 = vector.broadcast %11 : vector<1x16xf32> to vector<8x16xf32>
    %13 = arith.addf %10, %12 : vector<8x16xf32>
    %cst_11 = arith.constant 0.000000e+00 : f32
    %14 = vector.broadcast %cst_11 : f32 to vector<8x16xf32>
    %15 = arith.maximumf %13, %14 : vector<8x16xf32>
    %16 = arith.truncf %15 : vector<8x16xf32> to vector<8x16xbf16>
    %c0_12 = arith.constant 0 : index
    %c0_13 = arith.constant 0 : index
    %17 = vector.load %arg6[%c0_12, %c0_13] : memref<16x128xbf16, #tpu.memory_space<vmem>>, vector<16x128xbf16>
    %cst_14 = arith.constant dense<0.000000e+00> : vector<8x128xf32>
    %18 = tpu.matmul %16, %17, %cst_14 {dimension_numbers = #tpu.dot_dimension_numbers<[1], [0], [0], [1], [0, 0, 1, 1], [], []>} : vector<8x16xbf16>, vector<16x128xbf16>, vector<8x128xf32> -> vector<8x128xf32>
    %c0_15 = arith.constant 0 : index
    %c0_16 = arith.constant 0 : index
    %19 = vector.load %arg7[%c0_15, %c0_16] : memref<1x128xf32, #tpu.memory_space<vmem>>, vector<1x128xf32>
    %20 = vector.broadcast %19 : vector<1x128xf32> to vector<8x128xf32>
    %21 = arith.addf %18, %20 : vector<8x128xf32>
    %cst_17 = arith.constant dense<0xFF800000> : vector<8xf32>
    %22 = vector.multi_reduction <maximumf>, %21, %cst_17 [1] : vector<8x128xf32> to vector<8xf32>
    %23 = vector.shape_cast %22 : vector<8xf32> to vector<8x1xf32>
    %24 = vector.broadcast %23 : vector<8x1xf32> to vector<8x128xf32>
    %25 = arith.subf %21, %24 : vector<8x128xf32>
    %26 = math.exp %25 : vector<8x128xf32>
    %cst_18 = arith.constant dense<0.000000e+00> : vector<8xf32>
    %27 = vector.multi_reduction <add>, %26, %cst_18 [1] : vector<8x128xf32> to vector<8xf32>
    %28 = vector.shape_cast %27 : vector<8xf32> to vector<8x1xf32>
    %29 = math.log %28 : vector<8x1xf32>
    %30 = vector.broadcast %29 : vector<8x1xf32> to vector<8x128xf32>
    %31 = arith.subf %25, %30 : vector<8x128xf32>
    %32 = arith.truncf %31 : vector<8x128xf32> to vector<8x128xbf16>
    %c0_19 = arith.constant 0 : index
    %c0_20 = arith.constant 0 : index
    %33 = vector.load %arg8[%c0_19, %c0_20] : memref<8x128xbf16, #tpu.memory_space<vmem>>, vector<8x128xbf16>
    tpu.vector_store %arg8[%c0_19, %c0_20], %32 {strides = array<i32>} : memref<8x128xbf16, #tpu.memory_space<vmem>>, vector<8x128xbf16>,
    return
  }
  func.func @transform_0(%arg0: i32) -> (i32, i32) {
    %c0_i32 = arith.constant 0 : i32
    %c0_i32_0 = arith.constant 0 : i32
    return %arg0, %c0_i32 : i32, i32
  }
  func.func @transform_1(%arg0: i32) -> (i32, i32) {
    %c0_i32 = arith.constant 0 : i32
    %c0_i32_0 = arith.constant 0 : i32
    %c0_i32_1 = arith.constant 0 : i32
    return %c0_i32, %c0_i32_0 : i32, i32
  }
  func.func @transform_2(%arg0: i32) -> (i32, i32) {
    %c0_i32 = arith.constant 0 : i32
    %c0_i32_0 = arith.constant 0 : i32
    %c0_i32_1 = arith.constant 0 : i32
    return %c0_i32, %c0_i32_0 : i32, i32
  }
  func.func @transform_3(%arg0: i32) -> (i32, i32) {
    %c0_i32 = arith.constant 0 : i32
    %c0_i32_0 = arith.constant 0 : i32
    %c0_i32_1 = arith.constant 0 : i32
    return %c0_i32, %c0_i32_0 : i32, i32
  }
  func.func @transform_4(%arg0: i32) -> (i32, i32) {
    %c0_i32 = arith.constant 0 : i32
    %c0_i32_0 = arith.constant 0 : i32
    %c0_i32_1 = arith.constant 0 : i32
    return %c0_i32, %c0_i32_0 : i32, i32
  }
  func.func @transform_5(%arg0: i32) -> (i32, i32) {
    %c0_i32 = arith.constant 0 : i32
    %c0_i32_0 = arith.constant 0 : i32
    %c0_i32_1 = arith.constant 0 : i32
    return %c0_i32, %c0_i32_0 : i32, i32
  }
  func.func @transform_6(%arg0: i32) -> (i32, i32) {
    %c0_i32 = arith.constant 0 : i32
    %c0_i32_0 = arith.constant 0 : i32
    %c0_i32_1 = arith.constant 0 : i32
    return %c0_i32, %c0_i32_0 : i32, i32
  }
  func.func @transform_7(%arg0: i32) -> (i32, i32) {
    %c0_i32 = arith.constant 0 : i32
    %c0_i32_0 = arith.constant 0 : i32
    return %arg0, %c0_i32 : i32, i32
  }
}

</mosaic_0001>

<bundles_post_ra>
// kernel: net_forward.1
= control target key start
LH: loop header
LB: loop body
LE: loop exit
PB: predicated region body
PF: predicated region fallthrough
CT: control target
= control target key end

     0   :  { %s1164_s0 = inlined_call_operand.vmem [shape: bf16[8,784], index: 0, kind: input, shape index: {}]   ;;  %s1165_s1 = inlined_call_operand.vmem [shape: bf16[784,32], index: 1, kind: input, shape index: {}]   ;;  %s1166_s2 = inlined_call_operand.vmem [shape: f32[1,32], index: 2, kind: input, shape index: {}]   ;;  %s1167_s3 = inlined_call_operand.vmem [shape: bf16[32,16], index: 3, kind: input, shape index: {}]   ;;  %s1168_s4 = inlined_call_operand.vmem [shape: f32[1,16], index: 4, kind: input, shape index: {}]   ;;  %s1169_s5 = inlined_call_operand.vmem [shape: bf16[16,128], index: 5, kind: input, shape index: {}]   ;;  %s1170_s6 = inlined_call_operand.vmem [shape: f32[1,128], index: 6, kind: input, shape index: {}]   ;;  %s1171_s7 = inlined_call_operand.hbm [shape: bf16[8,128], index: 7, kind: output, shape index: {}]  }
   0x1   :  { %v862_v0 = vld [vmem:[%s1165_s1 + $0x38] sm:$0xff]  ;;  %v861_v3 = vld [vmem:[%s1165_s1 + $0x30] sm:$0xff]  ;;  %v860_v8 = vld [vmem:[%s1165_s1 + $0x28] sm:$0xff] }
   0x2   :  { %v870_v1 = vld [vmem:[%s1165_s1 + $0x78] sm:$0xff]  ;;  %456 = vmatpush.bf16.msra.mxu0 %v862_v0  ;;  %v869_v4 = vld [vmem:[%s1165_s1 + $0x70] sm:$0xff]  ;;  %v868_v9 = vld [vmem:[%s1165_s1 + $0x68] sm:$0xff] }
   0x3   :  { %v878_v2 = vld [vmem:[%s1165_s1 + $0xb8] sm:$0xff]  ;;  %469 = vmatpush.bf16.msra.mxu1 %v870_v1  ;;  %v877_v5 = vld [vmem:[%s1165_s1 + $0xb0] sm:$0xff]  ;;  %v876_v10 = vld [vmem:[%s1165_s1 + $0xa8] sm:$0xff] }
   0x4   :  { %482 = vmatpush.bf16.msra.mxu2 %v878_v2  ;;  %v886_v6 = vld [vmem:[%s1165_s1 + $0xf8] sm:$0xff]  ;;  %v885_v7 = vld [vmem:[%s1165_s1 + $0xf0] sm:$0xff]  ;;  %v884_v11 = vld [vmem:[%s1165_s1 + $0xe8] sm:$0xff] }
   0x5   :  { %495 = vmatpush.bf16.msra.mxu3 %v886_v6  ;;  %v859_v12 = vld [vmem:[%s1165_s1 + $0x20] sm:$0xff]  ;;  %v858_v16 = vld [vmem:[%s1165_s1 + $0x18] sm:$0xff] }
   0x6   :  { %457 = vmatpush.bf16.msra.mxu0 %v861_v3  ;;  %v867_v13 = vld [vmem:[%s1165_s1 + $0x60] sm:$0xff]  ;;  %v866_v17 = vld [vmem:[%s1165_s1 + $0x58] sm:$0xff] }
   0x7   :  { %470 = vmatpush.bf16.msra.mxu1 %v869_v4  ;;  %v875_v14 = vld [vmem:[%s1165_s1 + $0xa0] sm:$0xff]  ;;  %v874_v18 = vld [vmem:[%s1165_s1 + $0x98] sm:$0xff] }
   0x8   :  { %483 = vmatpush.bf16.msra.mxu2 %v877_v5  ;;  %v883_v15 = vld [vmem:[%s1165_s1 + $0xe0] sm:$0xff] }
   0x9   :  { %496 = vmatpush.bf16.msra.mxu3 %v885_v7 }
   0xa   :  { %458 = vmatpush.bf16.msra.mxu0 %v860_v8 }
   0xb   :  { %471 = vmatpush.bf16.msra.mxu1 %v868_v9 }
   0xc   :  { %484 = vmatpush.bf16.msra.mxu2 %v876_v10 }
   0xd   :  { %497 = vmatpush.bf16.msra.mxu3 %v884_v11 }
   0xe   :  { %459 = vmatpush.bf16.msra.mxu0 %v859_v12 }
   0xf   :  { %472 = vmatpush.bf16.msra.mxu1 %v867_v13 }
  0x10   :  { %485 = vmatpush.bf16.msra.mxu2 %v875_v14 }
  0x11   :  { %12 = vsyncpa [#allocation3], 0  ;;  %498 = vmatpush.bf16.msra.mxu3 %v883_v15  ;;  %v882_v19 = vld [vmem:[%s1165_s1 + $0xd8] sm:$0xff]  ;;  %v857_v20 = vld [vmem:[%s1165_s1 + $0x10] sm:$0xff]  ;;  %vm452_vm0 = vcmask 130048   ;;  %vm569_vm1 = vcmask 261120  }
  0x12   :  { %460 = vmatpush.bf16.msra.mxu0 %v858_v16  ;;  %v865_v21 = vld [vmem:[%s1165_s1 + $0x50] sm:$0xff]  ;;  %v856_v24 = vld [vmem:[%s1165_s1 + $0x8] sm:$0xff]  ;;  %v28_v26 = vld [vmem:[%s1164_s0] sm:$0xff] }
  0x13   :  { %473 = vmatpush.bf16.msra.mxu1 %v866_v17  ;;  %v873_v22 = vld [vmem:[%s1165_s1 + $0x90] sm:$0xff]  ;;  %v864_v25 = vld [vmem:[%s1165_s1 + $0x48] sm:$0xff]  ;;  %v138_v29 = vunpack.c.l.b16 %v28_v26  ;;  %v139_v31 = vunpack.c.h.b16 %v28_v26  ;;  %v855_v32 = vld [vmem:[%s1165_s1] sm:$0xff] }
  0x14   :  { %486 = vmatpush.bf16.msra.mxu2 %v874_v18  ;;  %v881_v23 = vld [vmem:[%s1165_s1 + $0xd0] sm:$0xff]  ;;  %v872_v27 = vld [vmem:[%s1165_s1 + $0x88] sm:$0xff]  ;;  %v863_v33 = vld [vmem:[%s1165_s1 + $0x40] sm:$0xff] }
  0x15   :  { %499 = vmatpush.bf16.msra.mxu3 %v882_v19  ;;  %v29_v28 = vld [vmem:[%s1164_s0 + $0x8] sm:$0xff]  ;;  %v894_v34 = vld [vmem:[%s1165_s1 + $0x138] sm:$0xff]  ;;  %v871_v36 = vld [vmem:[%s1165_s1 + $0x80] sm:$0xff]  ;;  %v145_v38 = vpack.c.b16 %v138_v29, %v138_v29  ;;  %v146_v39 = vpack.c.b16 %v139_v31, %v139_v31 }
  0x16   :  { %461 = vmatpush.bf16.msra.mxu0 %v857_v20  ;;  %v880_v30 = vld [vmem:[%s1165_s1 + $0xc8] sm:$0xff]  ;;  %v902_v35 = vld [vmem:[%s1165_s1 + $0x178] sm:$0xff]  ;;  %v140_v37 = vunpack.c.l.b16 %v29_v28  ;;  %v141_v40 = vunpack.c.h.b16 %v29_v28  ;;  %v879_v41 = vld [vmem:[%s1165_s1 + $0xc0] sm:$0xff] }
  0x17   :  { %474 = vmatpush.bf16.msra.mxu1 %v865_v21  ;;  %v903_v42 = vld [vmem:[%s1165_s1 + $0x180] sm:$0xff]  ;;  %v893_v43 = vld [vmem:[%s1165_s1 + $0x130] sm:$0xff]  ;;  %v892_v47 = vld [vmem:[%s1165_s1 + $0x128] sm:$0xff] }
  0x18   :  { %487 = vmatpush.bf16.msra.mxu2 %v873_v22  ;;  %v901_v44 = vld [vmem:[%s1165_s1 + $0x170] sm:$0xff]  ;;  %v147_v45 = vpack.c.b16 %v140_v37, %v140_v37  ;;  %v148_v46 = vpack.c.b16 %v141_v40, %v141_v40  ;;  %v900_v48 = vld [vmem:[%s1165_s1 + $0x168] sm:$0xff]  ;;  %v891_v49 = vld [vmem:[%s1165_s1 + $0x120] sm:$0xff] }
  0x19   :  { %500 = vmatpush.bf16.msra.mxu3 %v881_v23  ;;  %v899_v50 = vld [vmem:[%s1165_s1 + $0x160] sm:$0xff]  ;;  %v31_v51 = vld [vmem:[%s1164_s0 + $0x18] sm:$0xf]  ;;  %v889_v55 = vld [vmem:[%s1165_s1 + $0x110] sm:$0xff] }
  0x1a   :  { %462 = vmatpush.bf16.msra.mxu0 %v856_v24  ;;  %v890_v52 = vld [vmem:[%s1165_s1 + $0x118] sm:$0xff]  ;;  %v144_v54 = vunpack.c.l.b16 %v31_v51  ;;  %v897_v56 = vld [vmem:[%s1165_s1 + $0x150] sm:$0xff]  ;;  %v888_v58 = vld [vmem:[%s1165_s1 + $0x108] sm:$0xff] }
  0x1b   :  { %475 = vmatpush.bf16.msra.mxu1 %v864_v25  ;;  %v898_v53 = vld [vmem:[%s1165_s1 + $0x158] sm:$0xff]  ;;  %v896_v59 = vld [vmem:[%s1165_s1 + $0x148] sm:$0xff]  ;;  %v30_v60 = vld [vmem:[%s1164_s0 + $0x10] sm:$0xff] }
  0x1c   :  { %488 = vmatpush.bf16.msra.mxu2 %v872_v27  ;;  %v151_v57 = vpack.c.b16 %v144_v54, %v144_v54  ;;  %v142_v61 = vunpack.c.l.b16 %v30_v60  ;;  %v143_v62 = vunpack.c.h.b16 %v30_v60  ;;  %v887_v63 = vld [vmem:[%s1165_s1 + $0x100] sm:$0xff]  ;;  %v905_v3 = vld [vmem:[%s1167_s3 + $0x8] sm:$0xff] }
  0x1d   :  { %501 = vmatpush.bf16.msra.mxu3 %v880_v30  ;;  %v895_v0 = vld [vmem:[%s1165_s1 + $0x140] sm:$0xff] }
  0x1e   :  { %463 = vmatpush.bf16.msra.mxu0 %v855_v32  ;;  %v149_v1 = vpack.c.b16 %v142_v61, %v142_v61  ;;  %v150_v2 = vpack.c.b16 %v143_v62, %v143_v62  ;;  %v904_v6 = vld [vmem:[%s1167_s3] sm:$0xff] }
  0x1f   :  { %476 = vmatpush.bf16.msra.mxu1 %v863_v33  ;;  %v906_v9 = vld [vmem:[%s1169_s5] sm:$0xff] }
  0x20   :  { %489 = vmatpush.bf16.msra.mxu2 %v871_v36  ;;  %v908_v12 = vld [vmem:[%s1166_s2] ss:$0 sm:$0xff] }
  0x21   :  { %464 = vmatmul.bf16.vlgmr.msra.gmra.mxu0 %v145_v38  ;;  %502 = vmatpush.bf16.msra.mxu3 %v879_v41  ;;  %v909_v30 = vld [vmem:[%s1168_s4] ss:$0 sm:$0xff]  ;;  %s941_s4 = smov [#allocation2]  }
  0x22   :  { %508 = vmatpush.bf16.msrb.mxu0 %v894_v34  ;;  %477 = vmatmul.bf16.vlgmr.msra.gmra.mxu1 %v146_v39  ;;  %v910_v36 = vld [vmem:[%s1170_s6] ss:$0 sm:$0xff]  ;;  %s633_s22 = sshll.u32 %s941_s4, 4  ;;  %s635_s6 = sshll.u32 %s1171_s7, 4  ;;  %s634_s22 = int_to_ptr.vmem [resolvable:$true] %s633_s22  ;;  %s636_s6 = int_to_ptr.hbm [resolvable:$true] %s635_s6 }
  0x23   :  { %521 = vmatpush.bf16.msrb.mxu1 %v902_v35  ;;  %490 = vmatmul.bf16.vlgmr.msra.gmra.mxu2 %v147_v45 }
  0x24   :  { %541 = vmatpush.bf16.msrb.mxu2 %v903_v42  ;;  %503 = vmatmul.bf16.vlgmr.msra.gmra.mxu3 %v148_v46 }
  0x25   :  { %579 = vmatpush.bf16.msrb.mxu3 %v905_v3 }
  0x26   :  { %509 = vmatpush.bf16.msrb.mxu0 %v893_v43 }
  0x27   :  { %522 = vmatpush.bf16.msrb.mxu1 %v901_v44 }
  0x28   :  { %610 = vmatpush.bf16.msra.mxu2 %v906_v9 }
  0x29   :  { %580 = vmatpush.bf16.msrb.mxu3 %v904_v6 }
  0x2a   :  { %510 = vmatpush.bf16.msrb.mxu0 %v892_v47 }
  0x2b   :  { %523 = vmatpush.bf16.msrb.mxu1 %v900_v48 }
  0x2e   :  { %511 = vmatpush.bf16.msrb.mxu0 %v891_v49 }
  0x2f   :  { %524 = vmatpush.bf16.msrb.mxu1 %v899_v50 }
  0x32   :  { %512 = vmatpush.bf16.msrb.mxu0 %v890_v52 }
  0x33   :  { %525 = vmatpush.bf16.msrb.mxu1 %v898_v53  ;;  %840 = vmatmul.msk.bf16.vlgmr.msrb.gmra.mxu2 %vm452_vm0, %v151_v57 }
  0x36   :  { %513 = vmatpush.bf16.msrb.mxu0 %v889_v55 }
  0x37   :  { %526 = vmatpush.bf16.msrb.mxu1 %v897_v56 }
  0x3a   :  { %514 = vmatpush.bf16.msrb.mxu0 %v888_v58 }
  0x3b   :  { %527 = vmatpush.bf16.msrb.mxu1 %v896_v59 }
  0x3e   :  { %515 = vmatpush.bf16.msrb.mxu0 %v887_v63 }
  0x3f   :  { %528 = vmatpush.bf16.msrb.mxu1 %v895_v0 }
  0x41   :  { %516 = vmatmul.bf16.vlgmr.msrb.gmra.mxu0 %v149_v1 }
  0x42   :  { %529 = vmatmul.bf16.vlgmr.msrb.gmra.mxu1 %v150_v2 }
  0x9e   :  { %v465_v4 = vpop.f32.mrf.mxu0 }
  0x9f   :  { %v478_v5 = vpop.f32.mrf.mxu1  ;;  %v466_v13 = vadd.f32 %v908_v12, %v465_v4 }
  0xa1   :  { %v479_v16 = vadd.f32 %v478_v5, %v466_v13 }
  0xa6   :  { %v467_v7 = vpop.f32.mrf.mxu0  ;;  %v491_v10 = vpop.f32.mrf.mxu2 }
  0xa7   :  { %v480_v8 = vpop.f32.mrf.mxu1  ;;  %v504_v11 = vpop.f32.mrf.mxu3  ;;  %v492_v17 = vadd.f32 %v491_v10, %v479_v16 }
  0xa9   :  { %v505_v19 = vadd.f32 %v504_v11, %v492_v17 }
  0xae   :  { %v493_v14 = vpop.f32.mrf.mxu2 }
  0xaf   :  { %v506_v15 = vpop.f32.mrf.mxu3 }
  0xb6   :  { %v543_v18 = vpop.f32.mrf.mxu2 }
  0xbe   :  { %v517_v20 = vpop.f32.mrf.mxu0  ;;  %v545_v24 = vpop.f32.mrf.mxu2 }
  0xbf   :  { %v530_v21 = vpop.f32.mrf.mxu1  ;;  %v518_v22 = vadd.f32 %v517_v20, %v505_v19 }
  0xc1   :  { %v531_v23 = vadd.f32 %v530_v21, %v518_v22 }
  0xc3   :  { %v544_v25 = vadd.f32 %v543_v18, %v531_v23 }
  0xc5   :  { %v547_v26 = vmax.f32 %v544_v25, 0.0 }
  0xc6   :  { %v519_v27 = vpop.f32.mrf.mxu0 }
  0xc7   :  { %v532_v28 = vpop.f32.mrf.mxu1  ;;  %v548_v29 = vpack.c.bf16 %v547_v26, %v547_v26 }
  0xc9   :  { %849 = vmatmul.msk.bf16.vlgmr.msrb.gmra.mxu3 %vm569_vm1, %v548_v29 }
 0x14c   :  { %v582_v31 = vpop.f32.mrf.mxu3 }
 0x14d   :  { %v583_v32 = vadd.f32 %v909_v30, %v582_v31 }
 0x14f   :  { %v586_v33 = vmax.f32 %v583_v32, 0.0 }
 0x151   :  { %v587_v34 = vpack.c.bf16 %v586_v33, %v586_v33 }
 0x153   :  { %854 = vmatmul.msk.bf16.vlgmr.msra.gmra.mxu2 %vm452_vm0, %v587_v34 }
 0x154   :  { %v584_v35 = vpop.f32.mrf.mxu3 }
 0x1d6   :  { %v612_v37 = vpop.f32.mrf.mxu2 }
 0x1d7   :  { %v613_v38 = vadd.f32 %v910_v36, %v612_v37 }
 0x1d9   :  { %616 = vmax.xlane.f32.xlu0 %v613_v38 }
 0x1de   :  { %v614_v39 = vpop.f32.mrf.mxu2 }
 0x24c   :  { %v617_v40 = vpop.xlane.xlu0 %616 }
 0x24d   :  { %v618_v41 = vsub.f32 %v613_v38, %v617_v40 }
 0x24f   :  { %v619_v42 = vmul.f32 1.442695, %v618_v41 }
 0x251   :  { %911 = vpow2.f32 %v619_v42 }
 0x257   :  { %v912_v43 = vpop.eup %911 }
 0x258   :  { %621 = vadd.xlane.f32.xlu0 %v912_v43 }
 0x2cb   :  { %v622_v44 = vpop.xlane.xlu0 %621 }
 0x2cc   :  { %913 = vlog2.f32 %v622_v44 }
 0x2d2   :  { %v914_v45 = vpop.eup %913 }
 0x2d3   :  { %v624_v46 = vmul.f32 0.6931472, %v914_v45 }
 0x2d5   :  { %v625_v47 = vsub.f32 %v618_v41, %v624_v46 }
 0x2d7   :  { %v626_v48 = vpack.c.bf16 %v625_v47, %v625_v47 }
 0x2d9   :  { %627 = vst [vmem:[#allocation2] sm:$0xf] %v626_v48 }
 0x2da   :  { %638 = dma.vmem_to_hbm [thread:$0]  %s634_s22, 64, %s636_s6, [#allocation3]  }
 0x2db   :  { %939 = dma.done.wait [#allocation3], 64  }
 0x2dc   :  { %940 = vsyncadd [#allocation3], 4294967232 }
 0x2dd   :  { %643 = vsyncpa [#allocation3], 1 }

</bundles_post_ra>
